<compile_context>
chip_gen: v7x
topology: tpu7x:2x2x1
jax: 0.10.0
libtpu: 0.0.40
codegen_flags: <defaults>
</compile_context>

<pallas_src>
import jax
import jax.numpy as jnp
import numpy as np
from jax.experimental import pallas as pl
from jax.experimental.pallas import tpu as pltpu

NEG_SLOPE = 0.01
K1 = 5                     # first conv kernel size (module's kernel_size)
K2 = 3                     # second conv kernel size (fixed to 3 in the module)
PAD = (K1 - 1) // 2 + 1    # ReplicationPad1d amount for odd kernel -> 3

# Branch indices in the stacked weight arrays.
PHI, PSI, U, P = 0, 1, 2, 3


# ---------------------------------------------------------------------------
# In-kernel helpers
# ---------------------------------------------------------------------------
def _rep_pad(x, pad):
    # x: (Bt, L, C) -> (Bt, L + 2*pad, C), replicate edge rows along L.
    b, l, c = x.shape
    left = jnp.broadcast_to(x[:, :1, :], (b, pad, c))
    right = jnp.broadcast_to(x[:, l - 1:, :], (b, pad, c))
    return jnp.concatenate([left, x, right], axis=1)


def _pair_branch_padded(xp, w1, b1, w2, b2):
    """Fused branch pair on an already replication-padded input.

    xp: (Bt, L+2*PAD, 2C)  channels-concatenated [a | b]
    w1: (K1*2C, 2H) block-diagonal, tap-major rows; b1: (1, 2H)
    w2: (K2*2H, 2C) block-diagonal, tap-major rows; b2: (1, 2C)
    Returns (Bt, L, 2C) = [branch_i(a) | branch_j(b)].

    Batch*rows is collapsed into the matmul M dim -> one 2-D dot per conv.
    """
    bt, lp, c2 = xp.shape
    l1 = lp - (K1 - 1)                               # = L + 2
    # im2col for conv1: taps major, channels minor -> matches weight row order.
    cols1 = jnp.concatenate([xp[:, k:k + l1, :] for k in range(K1)], axis=-1)
    cols1 = cols1.reshape(bt * l1, K1 * c2)          # M = Bt*L1
    h = jnp.dot(cols1, w1, preferred_element_type=jnp.float32) + b1
    h = jnp.where(h > 0, h, NEG_SLOPE * h)           # LeakyReLU(0.01)
    # Dropout: identity (eval mode)
    n_hid = h.shape[-1]
    h = h.reshape(bt, l1, n_hid)

    l2 = l1 - (K2 - 1)                               # = L
    cols2 = jnp.concatenate([h[:, k:k + l2, :] for k in range(K2)], axis=-1)
    cols2 = cols2.reshape(bt * l2, K2 * n_hid)       # M = Bt*L
    y = jnp.dot(cols2, w2, preferred_element_type=jnp.float32) + b2
    y = jnp.tanh(y)
    return y.reshape(bt, l2, c2)


def levelscinet_kernel(z1_ref, w1a_ref, b1a_ref, w2a_ref, b2a_ref,
                       w1b_ref, b1b_ref, w2b_ref, b2b_ref,
                       even_ref, odd_ref):
    z1 = z1_ref[...].astype(jnp.float32)             # (Bt, L, 2C) = [xe | xo]
    bt, l, c2 = z1.shape
    c = c2 // 2

    # Pair A: [phi(xe) | psi(xo)]  (replication pad done in-kernel)
    z1p = _rep_pad(z1, PAD)
    g = _pair_branch_padded(z1p, w1a_ref[...], b1a_ref[...],
                            w2a_ref[...], b2a_ref[...])

    z_sw = jnp.concatenate([z1[..., c:], z1[..., :c]], axis=-1)   # [xo | xe]
    z2 = z_sw * jnp.exp(g)                            # [d | c]

    # Pair B: [U(d) | P(c)]
    z2p = _rep_pad(z2, PAD)
    up = _pair_branch_padded(z2p, w1b_ref[...], b1b_ref[...],
                             w2b_ref[...], b2b_ref[...])

    even_ref[...] = (z2[..., c:] + up[..., :c]).astype(even_ref.dtype)  # c + U(d)
    odd_ref[...] = (z2[..., :c] - up[..., c:]).astype(odd_ref.dtype)    # d - P(c)


# ---------------------------------------------------------------------------
# Host-side weight preprocessing (block-diagonal, tap-major, pre-transposed)
# ---------------------------------------------------------------------------
def _pair_weights(w1, b1, w2, b2, i, j):
    """Build fused weights for branches (i, j).

    w1: (4, H, C, K1)  b1: (4, H)  w2: (4, C, H, K2)  b2: (4, C)
    Returns W1 (K1*2C, 2H), B1 (1, 2H), W2 (K2*2H, 2C), B2 (1, 2C).
    """
    f32 = jnp.float32
    h_dim, c_dim = w1.shape[1], w1.shape[2]

    w1i = jnp.transpose(w1[i].astype(f32), (2, 1, 0))   # (K1, C, H)
    w1j = jnp.transpose(w1[j].astype(f32), (2, 1, 0))
    zch = jnp.zeros((K1, c_dim, h_dim), f32)
    W1 = jnp.concatenate(
        [jnp.concatenate([w1i, zch], axis=2),            # rows for [a] channels
         jnp.concatenate([zch, w1j], axis=2)],           # rows for [b] channels
        axis=1).reshape(K1 * 2 * c_dim, 2 * h_dim)
    B1 = jnp.concatenate([b1[i], b1[j]]).astype(f32)[None, :]

    w2i = jnp.transpose(w2[i].astype(f32), (2, 1, 0))   # (K2, H, C)
    w2j = jnp.transpose(w2[j].astype(f32), (2, 1, 0))
    zhc = jnp.zeros((K2, h_dim, c_dim), f32)
    W2 = jnp.concatenate(
        [jnp.concatenate([w2i, zhc], axis=2),
         jnp.concatenate([zhc, w2j], axis=2)],
        axis=1).reshape(K2 * 2 * h_dim, 2 * c_dim)
    B2 = jnp.concatenate([b2[i], b2[j]]).astype(f32)[None, :]
    return W1, B1, W2, B2


# ---------------------------------------------------------------------------
# Tiling / VMEM sizing
# ---------------------------------------------------------------------------
def _round_up(x, m):
    return -(-x // m) * m


def _pick_batch_tile(b, l, c, h):
    """Batch-tile size from a lane/sublane-padded f32 live-byte estimate."""
    lane = lambda n: _round_up(n, 128)
    rows = lambda n: _round_up(n, 8)
    lp, l1 = l + 2 * PAD, l + 2
    per_b = 4 * (
        2 * (rows(lp) * lane(2 * c)             # z1p / z2p
             + rows(l1) * lane(K1 * 2 * c)      # cols1
             + rows(l1) * lane(2 * h)           # hidden activations
             + rows(l) * lane(K2 * 2 * h)       # cols2
             + rows(l) * lane(2 * c))           # g / up
        + 3 * rows(l) * lane(2 * c))            # z1, z_sw, z2
    # Conservative 8 MiB/step budget: 2x headroom under v5e's 16 MiB scoped
    # default and well under v7x's 64 MiB physical VMEM with double-buffering.
    budget = 8 * 1024 * 1024
    bt = max(1, min(b, budget // max(per_b, 1)))
    while b % bt:                 # largest divisor of b within the budget
        bt -= 1
    if bt == b and b > 1:         # keep >= 2 grid steps: enables prefetch /
        bt = b // 2               # writeback overlap and v7x megacore split
        while b % bt:
            bt -= 1
    return bt, per_b


# ---------------------------------------------------------------------------
# Forward
# ---------------------------------------------------------------------------
@jax.jit
def levelscinet_forward(x, w1, b1, w2, b2):
    """x: (B, T, C). Returns (even_update, odd_update), each (B, T//2, C)."""
    bsz, t, c = x.shape
    assert t % 2 == 0, "LevelSCINet even/odd split requires an even time length"
    h_dim = w1.shape[1]
    l = t // 2

    # Free row-major relabel in HBM: (B, T, C) -> (B, L, 2C) with
    # row l = [x[:, 2l, :] | x[:, 2l+1, :]] = [x_even | x_odd] channel-concat.
    # No host-side split/concat/pad materialization and no host f32 up-cast.
    z1 = x.reshape(bsz, l, 2 * c)

    W1a, B1a, W2a, B2a = _pair_weights(w1, b1, w2, b2, PHI, PSI)
    W1b, B1b, W2b, B2b = _pair_weights(w1, b1, w2, b2, U, P)

    bt, per_b = _pick_batch_tile(bsz, l, c, h_dim)
    grid = (bsz // bt,)

    weight_bytes = 4 * 2 * (W1a.size + B1a.size + W2a.size + B2a.size)
    io_bytes = 2 * 2 * bt * l * 2 * c * x.dtype.itemsize   # dbl-buffered in+out
    est_vmem = bt * per_b + weight_bytes + io_bytes
    vmem_limit = None
    if est_vmem > 12 * 1024 * 1024:
        # Leave headroom but stay safely below v7x's 64 MiB physical VMEM.
        vmem_limit = int(min(56 * 1024 * 1024, est_vmem * 3 // 2))

    # Cost estimate: performed (block-diagonal) matmul flops, actual HBM dtypes.
    l1 = l + 2
    flops = 2 * 2 * bsz * (l1 * (K1 * 2 * c) * (2 * h_dim)
                           + l * (K2 * 2 * h_dim) * (2 * c))
    transcendentals = 3 * bsz * l * 2 * c            # exp + 2x tanh
    bytes_accessed = (z1.size * z1.dtype.itemsize            # input
                      + 2 * bsz * l * c * x.dtype.itemsize   # even + odd out
                      + weight_bytes)
    cost = pl.CostEstimate(flops=flops, transcendentals=transcendentals,
                           bytes_accessed=bytes_accessed)

    even, odd = pl.pallas_call(
        levelscinet_kernel,
        out_shape=(jax.ShapeDtypeStruct((bsz, l, c), x.dtype),
                   jax.ShapeDtypeStruct((bsz, l, c), x.dtype)),
        grid=grid,
        in_specs=[
            pl.BlockSpec((bt, l, 2 * c), lambda i: (i, 0, 0)),
            # Constant index maps -> fused weights stay VMEM-resident.
            pl.BlockSpec(W1a.shape, lambda i: (0, 0)),
            pl.BlockSpec(B1a.shape, lambda i: (0, 0)),
            pl.BlockSpec(W2a.shape, lambda i: (0, 0)),
            pl.BlockSpec(B2a.shape, lambda i: (0, 0)),
            pl.BlockSpec(W1b.shape, lambda i: (0, 0)),
            pl.BlockSpec(B1b.shape, lambda i: (0, 0)),
            pl.BlockSpec(W2b.shape, lambda i: (0, 0)),
            pl.BlockSpec(B2b.shape, lambda i: (0, 0)),
        ],
        out_specs=(pl.BlockSpec((bt, l, c), lambda i: (i, 0, 0)),
                   pl.BlockSpec((bt, l, c), lambda i: (i, 0, 0))),
        compiler_params=pltpu.CompilerParams(
            dimension_semantics=("parallel",),      # v7x megacore over batch
            vmem_limit_bytes=vmem_limit),
        cost_estimate=cost,
    )(z1, W1a, B1a, W2a, B2a, W1b, B1b, W2b, B2b)

    return even, odd


# ---------------------------------------------------------------------------
# Pure-JAX reference mimicking the PyTorch NCL path (for a sanity check).
# ---------------------------------------------------------------------------
def _ref_branch(x_ncl, w1, b1, w2, b2):
    pad = PAD
    xp = jnp.concatenate([jnp.repeat(x_ncl[:, :, :1], pad, axis=2),
                          x_ncl,
                          jnp.repeat(x_ncl[:, :, -1:], pad, axis=2)], axis=2)
    dn = ('NCH', 'OIH', 'NCH')
    h = jax.lax.conv_general_dilated(xp, w1, (1,), 'VALID',
                                     dimension_numbers=dn) + b1[None, :, None]
    h = jnp.where(h > 0, h, NEG_SLOPE * h)
    y = jax.lax.conv_general_dilated(h, w2, (1,), 'VALID',
                                     dimension_numbers=dn) + b2[None, :, None]
    return jnp.tanh(y)


def _ref_forward(x, w1, b1, w2, b2):
    xe = jnp.transpose(x[:, ::2, :], (0, 2, 1))      # (B, C, L)
    xo = jnp.transpose(x[:, 1::2, :], (0, 2, 1))
    d = xo * jnp.exp(_ref_branch(xe, w1[PHI], b1[PHI], w2[PHI], b2[PHI]))
    c = xe * jnp.exp(_ref_branch(xo, w1[PSI], b1[PSI], w2[PSI], b2[PSI]))
    even = c + _ref_branch(d, w1[U], b1[U], w2[U], b2[U])
    odd = d - _ref_branch(c, w1[P], b1[P], w2[P], b2[P])
    return jnp.transpose(even, (0, 2, 1)), jnp.transpose(odd, (0, 2, 1))


if __name__ == "__main__":
    # LevelSCINet config: in_planes=C=4, kernel_size=5, dropout=0.5 (eval),
    # groups=1, hidden_size=8 (-> H = 32), INN=True.
    B, T, C = 2, 16, 4
    hidden_size = 8
    H = C * hidden_size

    key = jax.random.PRNGKey(0)
    kx, k1, k2, k3, k4 = jax.random.split(key, 5)

    x = jax.random.normal(kx, (B, T, C), dtype=jnp.float32)

    # Deterministic parameter init (PyTorch-Conv1d-like uniform bounds),
    # stacked across the 4 branches [phi, psi, U, P].
    bound1 = 1.0 / np.sqrt(C * K1)
    bound2 = 1.0 / np.sqrt(H * K2)
    w1 = jax.random.uniform(k1, (4, H, C, K1), jnp.float32, -bound1, bound1)
    b1 = jax.random.uniform(k2, (4, H), jnp.float32, -bound1, bound1)
    w2 = jax.random.uniform(k3, (4, C, H, K2), jnp.float32, -bound2, bound2)
    b2 = jax.random.uniform(k4, (4, C), jnp.float32, -bound2, bound2)

    even, odd = levelscinet_forward(x, w1, b1, w2, b2)
    jax.block_until_ready((even, odd))

    ref_even, ref_odd = _ref_forward(x, w1, b1, w2, b2)
    np.testing.assert_allclose(np.asarray(even), np.asarray(ref_even),
                               rtol=1e-4, atol=1e-4)
    np.testing.assert_allclose(np.asarray(odd), np.asarray(ref_odd),
                               rtol=1e-4, atol=1e-4)
    assert even.shape == (B, T // 2, C) and odd.shape == (B, T // 2, C)

    print("KERNEL_OK")
</pallas_src>

<mosaic_0001>
module attributes {stable_mosaic.version = 11 : i64} {
  func.func @levelscinet_kernel(%arg0: i32, %arg1: memref<1x8x8xf32, #tpu.memory_space<vmem>>, %arg2: memref<40x64xf32, #tpu.memory_space<vmem>>, %arg3: memref<1x64xf32, #tpu.memory_space<vmem>>, %arg4: memref<192x8xf32, #tpu.memory_space<vmem>>, %arg5: memref<1x8xf32, #tpu.memory_space<vmem>>, %arg6: memref<40x64xf32, #tpu.memory_space<vmem>>, %arg7: memref<1x64xf32, #tpu.memory_space<vmem>>, %arg8: memref<192x8xf32, #tpu.memory_space<vmem>>, %arg9: memref<1x8xf32, #tpu.memory_space<vmem>>, %arg10: memref<1x8x4xf32, #tpu.memory_space<vmem>>, %arg11: memref<1x8x4xf32, #tpu.memory_space<vmem>>) attributes {dimension_semantics = [#tpu.dimension_semantics<parallel>], iteration_bounds = array<i64: 2>, scalar_prefetch = 0 : i64, scratch_operands = 0 : i64, tpu.core_type = #tpu.core_type<tc>, window_params = [{transform_indices = @transform_0, window_bounds = array<i64: 1, 8, 8>}, {pipeline_mode = #tpu.pipeline_mode<synchronous>, transform_indices = @transform_1, window_bounds = array<i64: 40, 64>}, {pipeline_mode = #tpu.pipeline_mode<synchronous>, transform_indices = @transform_2, window_bounds = array<i64: 1, 64>}, {pipeline_mode = #tpu.pipeline_mode<synchronous>, transform_indices = @transform_3, window_bounds = array<i64: 192, 8>}, {pipeline_mode = #tpu.pipeline_mode<synchronous>, transform_indices = @transform_4, window_bounds = array<i64: 1, 8>}, {pipeline_mode = #tpu.pipeline_mode<synchronous>, transform_indices = @transform_5, window_bounds = array<i64: 40, 64>}, {pipeline_mode = #tpu.pipeline_mode<synchronous>, transform_indices = @transform_6, window_bounds = array<i64: 1, 64>}, {pipeline_mode = #tpu.pipeline_mode<synchronous>, transform_indices = @transform_7, window_bounds = array<i64: 192, 8>}, {pipeline_mode = #tpu.pipeline_mode<synchronous>, transform_indices = @transform_8, window_bounds = array<i64: 1, 8>}, {transform_indices = @transform_9, window_bounds = array<i64: 1, 8, 4>}, {transform_indices = @transform_10, window_bounds = array<i64: 1, 8, 4>}]} {
    %c0 = arith.constant 0 : index
    %c0_0 = arith.constant 0 : index
    %c0_1 = arith.constant 0 : index
    %0 = vector.load %arg1[%c0, %c0_0, %c0_1] : memref<1x8x8xf32, #tpu.memory_space<vmem>>, vector<1x8x8xf32>
    %1 = vector.extract_strided_slice %0 {offsets = [0, 0, 0], sizes = [1, 1, 8], strides = [1, 1, 1]} : vector<1x8x8xf32> to vector<1x1x8xf32>
    %2 = vector.shape_cast %1 : vector<1x1x8xf32> to vector<1x1x8xf32>
    %3 = vector.broadcast %2 : vector<1x1x8xf32> to vector<1x3x8xf32>
    %4 = vector.extract_strided_slice %0 {offsets = [0, 7, 0], sizes = [1, 1, 8], strides = [1, 1, 1]} : vector<1x8x8xf32> to vector<1x1x8xf32>
    %5 = vector.shape_cast %4 : vector<1x1x8xf32> to vector<1x1x8xf32>
    %6 = vector.broadcast %5 : vector<1x1x8xf32> to vector<1x3x8xf32>
    %7 = tpu.concatenate %3, %0, %6 in 1 : vector<1x3x8xf32>, vector<1x8x8xf32>, vector<1x3x8xf32> -> vector<1x14x8xf32>
    %c0_2 = arith.constant 0 : index
    %c0_3 = arith.constant 0 : index
    %8 = vector.load %arg2[%c0_2, %c0_3] : memref<40x64xf32, #tpu.memory_space<vmem>>, vector<40x64xf32>
    %c0_4 = arith.constant 0 : index
    %c0_5 = arith.constant 0 : index
    %9 = vector.load %arg3[%c0_4, %c0_5] : memref<1x64xf32, #tpu.memory_space<vmem>>, vector<1x64xf32>
    %c0_6 = arith.constant 0 : index
    %c0_7 = arith.constant 0 : index
    %10 = vector.load %arg4[%c0_6, %c0_7] : memref<192x8xf32, #tpu.memory_space<vmem>>, vector<192x8xf32>
    %c0_8 = arith.constant 0 : index
    %c0_9 = arith.constant 0 : index
    %11 = vector.load %arg5[%c0_8, %c0_9] : memref<1x8xf32, #tpu.memory_space<vmem>>, vector<1x8xf32>
    %12 = vector.extract_strided_slice %7 {offsets = [0, 0, 0], sizes = [1, 10, 8], strides = [1, 1, 1]} : vector<1x14x8xf32> to vector<1x10x8xf32>
    %13 = vector.extract_strided_slice %7 {offsets = [0, 1, 0], sizes = [1, 10, 8], strides = [1, 1, 1]} : vector<1x14x8xf32> to vector<1x10x8xf32>
    %14 = vector.extract_strided_slice %7 {offsets = [0, 2, 0], sizes = [1, 10, 8], strides = [1, 1, 1]} : vector<1x14x8xf32> to vector<1x10x8xf32>
    %15 = vector.extract_strided_slice %7 {offsets = [0, 3, 0], sizes = [1, 10, 8], strides = [1, 1, 1]} : vector<1x14x8xf32> to vector<1x10x8xf32>
    %16 = vector.extract_strided_slice %7 {offsets = [0, 4, 0], sizes = [1, 10, 8], strides = [1, 1, 1]} : vector<1x14x8xf32> to vector<1x10x8xf32>
    %17 = tpu.concatenate %12, %13, %14, %15, %16 in 2 : vector<1x10x8xf32>, vector<1x10x8xf32>, vector<1x10x8xf32>, vector<1x10x8xf32>, vector<1x10x8xf32> -> vector<1x10x40xf32>
    %18 = vector.shape_cast %17 : vector<1x10x40xf32> to vector<10x40xf32>
    %cst = arith.constant dense<0.000000e+00> : vector<10x64xf32>
    %19 = tpu.matmul %18, %8, %cst {dimension_numbers = #tpu.dot_dimension_numbers<[1], [0], [0], [1], [0, 0, 1, 1], [], []>} : vector<10x40xf32>, vector<40x64xf32>, vector<10x64xf32> -> vector<10x64xf32>
    %20 = vector.broadcast %9 : vector<1x64xf32> to vector<10x64xf32>
    %21 = arith.addf %19, %20 : vector<10x64xf32>
    %cst_10 = arith.constant 0.000000e+00 : f32
    %22 = vector.broadcast %cst_10 : f32 to vector<10x64xf32>
    %23 = arith.cmpf ogt, %21, %22 : vector<10x64xf32>
    %cst_11 = arith.constant 0.00999999977 : f32
    %24 = vector.broadcast %cst_11 : f32 to vector<10x64xf32>
    %25 = arith.mulf %24, %21 : vector<10x64xf32>
    %26 = arith.select %23, %21, %25 : vector<10x64xi1>, vector<10x64xf32>
    %27 = vector.shape_cast %26 : vector<10x64xf32> to vector<1x10x64xf32>
    %28 = vector.extract_strided_slice %27 {offsets = [0, 0, 0], sizes = [1, 8, 64], strides = [1, 1, 1]} : vector<1x10x64xf32> to vector<1x8x64xf32>
    %29 = vector.extract_strided_slice %27 {offsets = [0, 1, 0], sizes = [1, 8, 64], strides = [1, 1, 1]} : vector<1x10x64xf32> to vector<1x8x64xf32>
    %30 = vector.extract_strided_slice %27 {offsets = [0, 2, 0], sizes = [1, 8, 64], strides = [1, 1, 1]} : vector<1x10x64xf32> to vector<1x8x64xf32>
    %31 = tpu.concatenate %28, %29, %30 in 2 : vector<1x8x64xf32>, vector<1x8x64xf32>, vector<1x8x64xf32> -> vector<1x8x192xf32>
    %32 = vector.shape_cast %31 : vector<1x8x192xf32> to vector<8x192xf32>
    %cst_12 = arith.constant dense<0.000000e+00> : vector<8x8xf32>
    %33 = tpu.matmul %32, %10, %cst_12 {dimension_numbers = #tpu.dot_dimension_numbers<[1], [0], [0], [1], [0, 0, 1, 1], [], []>} : vector<8x192xf32>, vector<192x8xf32>, vector<8x8xf32> -> vector<8x8xf32>
    %34 = vector.broadcast %11 : vector<1x8xf32> to vector<8x8xf32>
    %35 = arith.addf %33, %34 : vector<8x8xf32>
    %36 = math.tanh %35 : vector<8x8xf32>
    %37 = vector.shape_cast %36 : vector<8x8xf32> to vector<1x8x8xf32>
    %38 = vector.extract_strided_slice %0 {offsets = [0, 0, 4], sizes = [1, 8, 4], strides = [1, 1, 1]} : vector<1x8x8xf32> to vector<1x8x4xf32>
    %39 = vector.extract_strided_slice %0 {offsets = [0, 0, 0], sizes = [1, 8, 4], strides = [1, 1, 1]} : vector<1x8x8xf32> to vector<1x8x4xf32>
    %40 = tpu.concatenate %38, %39 in 2 : vector<1x8x4xf32>, vector<1x8x4xf32> -> vector<1x8x8xf32>
    %41 = math.exp %37 : vector<1x8x8xf32>
    %42 = arith.mulf %40, %41 : vector<1x8x8xf32>
    %43 = vector.extract_strided_slice %42 {offsets = [0, 0, 0], sizes = [1, 1, 8], strides = [1, 1, 1]} : vector<1x8x8xf32> to vector<1x1x8xf32>
    %44 = vector.shape_cast %43 : vector<1x1x8xf32> to vector<1x1x8xf32>
    %45 = vector.broadcast %44 : vector<1x1x8xf32> to vector<1x3x8xf32>
    %46 = vector.extract_strided_slice %42 {offsets = [0, 7, 0], sizes = [1, 1, 8], strides = [1, 1, 1]} : vector<1x8x8xf32> to vector<1x1x8xf32>
    %47 = vector.shape_cast %46 : vector<1x1x8xf32> to vector<1x1x8xf32>
    %48 = vector.broadcast %47 : vector<1x1x8xf32> to vector<1x3x8xf32>
    %49 = tpu.concatenate %45, %42, %48 in 1 : vector<1x3x8xf32>, vector<1x8x8xf32>, vector<1x3x8xf32> -> vector<1x14x8xf32>
    %c0_13 = arith.constant 0 : index
    %c0_14 = arith.constant 0 : index
    %50 = vector.load %arg6[%c0_13, %c0_14] : memref<40x64xf32, #tpu.memory_space<vmem>>, vector<40x64xf32>
    %c0_15 = arith.constant 0 : index
    %c0_16 = arith.constant 0 : index
    %51 = vector.load %arg7[%c0_15, %c0_16] : memref<1x64xf32, #tpu.memory_space<vmem>>, vector<1x64xf32>
    %c0_17 = arith.constant 0 : index
    %c0_18 = arith.constant 0 : index
    %52 = vector.load %arg8[%c0_17, %c0_18] : memref<192x8xf32, #tpu.memory_space<vmem>>, vector<192x8xf32>
    %c0_19 = arith.constant 0 : index
    %c0_20 = arith.constant 0 : index
    %53 = vector.load %arg9[%c0_19, %c0_20] : memref<1x8xf32, #tpu.memory_space<vmem>>, vector<1x8xf32>
    %54 = vector.extract_strided_slice %49 {offsets = [0, 0, 0], sizes = [1, 10, 8], strides = [1, 1, 1]} : vector<1x14x8xf32> to vector<1x10x8xf32>
    %55 = vector.extract_strided_slice %49 {offsets = [0, 1, 0], sizes = [1, 10, 8], strides = [1, 1, 1]} : vector<1x14x8xf32> to vector<1x10x8xf32>
    %56 = vector.extract_strided_slice %49 {offsets = [0, 2, 0], sizes = [1, 10, 8], strides = [1, 1, 1]} : vector<1x14x8xf32> to vector<1x10x8xf32>
    %57 = vector.extract_strided_slice %49 {offsets = [0, 3, 0], sizes = [1, 10, 8], strides = [1, 1, 1]} : vector<1x14x8xf32> to vector<1x10x8xf32>
    %58 = vector.extract_strided_slice %49 {offsets = [0, 4, 0], sizes = [1, 10, 8], strides = [1, 1, 1]} : vector<1x14x8xf32> to vector<1x10x8xf32>
    %59 = tpu.concatenate %54, %55, %56, %57, %58 in 2 : vector<1x10x8xf32>, vector<1x10x8xf32>, vector<1x10x8xf32>, vector<1x10x8xf32>, vector<1x10x8xf32> -> vector<1x10x40xf32>
    %60 = vector.shape_cast %59 : vector<1x10x40xf32> to vector<10x40xf32>
    %cst_21 = arith.constant dense<0.000000e+00> : vector<10x64xf32>
    %61 = tpu.matmul %60, %50, %cst_21 {dimension_numbers = #tpu.dot_dimension_numbers<[1], [0], [0], [1], [0, 0, 1, 1], [], []>} : vector<10x40xf32>, vector<40x64xf32>, vector<10x64xf32> -> vector<10x64xf32>
    %62 = vector.broadcast %51 : vector<1x64xf32> to vector<10x64xf32>
    %63 = arith.addf %61, %62 : vector<10x64xf32>
    %cst_22 = arith.constant 0.000000e+00 : f32
    %64 = vector.broadcast %cst_22 : f32 to vector<10x64xf32>
    %65 = arith.cmpf ogt, %63, %64 : vector<10x64xf32>
    %cst_23 = arith.constant 0.00999999977 : f32
    %66 = vector.broadcast %cst_23 : f32 to vector<10x64xf32>
    %67 = arith.mulf %66, %63 : vector<10x64xf32>
    %68 = arith.select %65, %63, %67 : vector<10x64xi1>, vector<10x64xf32>
    %69 = vector.shape_cast %68 : vector<10x64xf32> to vector<1x10x64xf32>
    %70 = vector.extract_strided_slice %69 {offsets = [0, 0, 0], sizes = [1, 8, 64], strides = [1, 1, 1]} : vector<1x10x64xf32> to vector<1x8x64xf32>
    %71 = vector.extract_strided_slice %69 {offsets = [0, 1, 0], sizes = [1, 8, 64], strides = [1, 1, 1]} : vector<1x10x64xf32> to vector<1x8x64xf32>
    %72 = vector.extract_strided_slice %69 {offsets = [0, 2, 0], sizes = [1, 8, 64], strides = [1, 1, 1]} : vector<1x10x64xf32> to vector<1x8x64xf32>
    %73 = tpu.concatenate %70, %71, %72 in 2 : vector<1x8x64xf32>, vector<1x8x64xf32>, vector<1x8x64xf32> -> vector<1x8x192xf32>
    %74 = vector.shape_cast %73 : vector<1x8x192xf32> to vector<8x192xf32>
    %cst_24 = arith.constant dense<0.000000e+00> : vector<8x8xf32>
    %75 = tpu.matmul %74, %52, %cst_24 {dimension_numbers = #tpu.dot_dimension_numbers<[1], [0], [0], [1], [0, 0, 1, 1], [], []>} : vector<8x192xf32>, vector<192x8xf32>, vector<8x8xf32> -> vector<8x8xf32>
    %76 = vector.broadcast %53 : vector<1x8xf32> to vector<8x8xf32>
    %77 = arith.addf %75, %76 : vector<8x8xf32>
    %78 = math.tanh %77 : vector<8x8xf32>
    %79 = vector.shape_cast %78 : vector<8x8xf32> to vector<1x8x8xf32>
    %80 = vector.extract_strided_slice %42 {offsets = [0, 0, 4], sizes = [1, 8, 4], strides = [1, 1, 1]} : vector<1x8x8xf32> to vector<1x8x4xf32>
    %81 = vector.extract_strided_slice %79 {offsets = [0, 0, 0], sizes = [1, 8, 4], strides = [1, 1, 1]} : vector<1x8x8xf32> to vector<1x8x4xf32>
    %82 = arith.addf %80, %81 : vector<1x8x4xf32>
    %c0_25 = arith.constant 0 : index
    %c0_26 = arith.constant 0 : index
    %c0_27 = arith.constant 0 : index
    %83 = vector.load %arg10[%c0_25, %c0_26, %c0_27] : memref<1x8x4xf32, #tpu.memory_space<vmem>>, vector<1x8x4xf32>
    tpu.vector_store %arg10[%c0_25, %c0_26, %c0_27], %82 {strides = array<i32>} : memref<1x8x4xf32, #tpu.memory_space<vmem>>, vector<1x8x4xf32>,
    %84 = vector.extract_strided_slice %42 {offsets = [0, 0, 0], sizes = [1, 8, 4], strides = [1, 1, 1]} : vector<1x8x8xf32> to vector<1x8x4xf32>
    %85 = vector.extract_strided_slice %79 {offsets = [0, 0, 4], sizes = [1, 8, 4], strides = [1, 1, 1]} : vector<1x8x8xf32> to vector<1x8x4xf32>
    %86 = arith.subf %84, %85 : vector<1x8x4xf32>
    %c0_28 = arith.constant 0 : index
    %c0_29 = arith.constant 0 : index
    %c0_30 = arith.constant 0 : index
    %87 = vector.load %arg11[%c0_28, %c0_29, %c0_30] : memref<1x8x4xf32, #tpu.memory_space<vmem>>, vector<1x8x4xf32>
    tpu.vector_store %arg11[%c0_28, %c0_29, %c0_30], %86 {strides = array<i32>} : memref<1x8x4xf32, #tpu.memory_space<vmem>>, vector<1x8x4xf32>,
    return
  }
  func.func @transform_0(%arg0: i32) -> (i32, i32, i32) {
    %c0_i32 = arith.constant 0 : i32
    %c0_i32_0 = arith.constant 0 : i32
    %c0_i32_1 = arith.constant 0 : i32
    return %arg0, %c0_i32, %c0_i32_0 : i32, i32, i32
  }
  func.func @transform_1(%arg0: i32) -> (i32, i32) {
    %c0_i32 = arith.constant 0 : i32
    %c0_i32_0 = arith.constant 0 : i32
    %c0_i32_1 = arith.constant 0 : i32
    return %c0_i32, %c0_i32_0 : i32, i32
  }
  func.func @transform_2(%arg0: i32) -> (i32, i32) {
    %c0_i32 = arith.constant 0 : i32
    %c0_i32_0 = arith.constant 0 : i32
    %c0_i32_1 = arith.constant 0 : i32
    return %c0_i32, %c0_i32_0 : i32, i32
  }
  func.func @transform_3(%arg0: i32) -> (i32, i32) {
    %c0_i32 = arith.constant 0 : i32
    %c0_i32_0 = arith.constant 0 : i32
    %c0_i32_1 = arith.constant 0 : i32
    return %c0_i32, %c0_i32_0 : i32, i32
  }
  func.func @transform_4(%arg0: i32) -> (i32, i32) {
    %c0_i32 = arith.constant 0 : i32
    %c0_i32_0 = arith.constant 0 : i32
    %c0_i32_1 = arith.constant 0 : i32
    return %c0_i32, %c0_i32_0 : i32, i32
  }
  func.func @transform_5(%arg0: i32) -> (i32, i32) {
    %c0_i32 = arith.constant 0 : i32
    %c0_i32_0 = arith.constant 0 : i32
    %c0_i32_1 = arith.constant 0 : i32
    return %c0_i32, %c0_i32_0 : i32, i32
  }
  func.func @transform_6(%arg0: i32) -> (i32, i32) {
    %c0_i32 = arith.constant 0 : i32
    %c0_i32_0 = arith.constant 0 : i32
    %c0_i32_1 = arith.constant 0 : i32
    return %c0_i32, %c0_i32_0 : i32, i32
  }
  func.func @transform_7(%arg0: i32) -> (i32, i32) {
    %c0_i32 = arith.constant 0 : i32
    %c0_i32_0 = arith.constant 0 : i32
    %c0_i32_1 = arith.constant 0 : i32
    return %c0_i32, %c0_i32_0 : i32, i32
  }
  func.func @transform_8(%arg0: i32) -> (i32, i32) {
    %c0_i32 = arith.constant 0 : i32
    %c0_i32_0 = arith.constant 0 : i32
    %c0_i32_1 = arith.constant 0 : i32
    return %c0_i32, %c0_i32_0 : i32, i32
  }
  func.func @transform_9(%arg0: i32) -> (i32, i32, i32) {
    %c0_i32 = arith.constant 0 : i32
    %c0_i32_0 = arith.constant 0 : i32
    %c0_i32_1 = arith.constant 0 : i32
    return %arg0, %c0_i32, %c0_i32_0 : i32, i32, i32
  }
  func.func @transform_10(%arg0: i32) -> (i32, i32, i32) {
    %c0_i32 = arith.constant 0 : i32
    %c0_i32_0 = arith.constant 0 : i32
    %c0_i32_1 = arith.constant 0 : i32
    return %arg0, %c0_i32, %c0_i32_0 : i32, i32, i32
  }
}

</mosaic_0001>

<bundles_post_ra>
// kernel: levelscinet_forward.1
= control target key start
LH: loop header
LB: loop body
LE: loop exit
PB: predicated region body
PF: predicated region fallthrough
CT: control target
= control target key end

     0   :  { %s1277_s13 = smov 0   ;;  %s1604_s0 = inlined_call_operand.vmem [shape: f32[2,8,8], index: 0, kind: input, shape index: {}]   ;;  %s1605_s1 = inlined_call_operand.vmem [shape: f32[40,64], index: 1, kind: input, shape index: {}]   ;;  %s1606_s2 = inlined_call_operand.vmem [shape: f32[1,64], index: 2, kind: input, shape index: {}]   ;;  %s1607_s3 = inlined_call_operand.vmem [shape: f32[192,8], index: 3, kind: input, shape index: {}]   ;;  %s1608_s4 = inlined_call_operand.vmem [shape: f32[1,8], index: 4, kind: input, shape index: {}]   ;;  %s1609_s5 = inlined_call_operand.vmem [shape: f32[40,64], index: 5, kind: input, shape index: {}]   ;;  %s1610_s6 = inlined_call_operand.vmem [shape: f32[1,64], index: 6, kind: input, shape index: {}]   ;;  %s1611_s7 = inlined_call_operand.vmem [shape: f32[192,8], index: 7, kind: input, shape index: {}]   ;;  %s1612_s8 = inlined_call_operand.vmem [shape: f32[1,8], index: 8, kind: input, shape index: {}]   ;;  %s1613_s9 = inlined_call_operand.vmem [shape: f32[2,8,4], index: 9, kind: output, shape index: {0}]   ;;  %s1614_s10 = inlined_call_operand.vmem [shape: f32[2,8,4], index: 10, kind: output, shape index: {1}]  }
   0x1 LB: > { %s1036_s14 = sadd.s32 4294967295, %s1212_s13   ;;  %p1040_p0 = scmp.ge.s32.totalorder %s1212_s13, 1  ;;  %s1212_s13 = sphi %s1277_s13, %s21_s13  }
   0x2   : > { %p314_p1 = scmp.lt.s32.totalorder %s1212_s13, 3 }
   0x4   : > { %p315_p2 = pnand %p1040_p0, %p314_p1 }
   0x5   : > { %p354_p3 = scmp.lt.s32.totalorder (!%p315_p2), %s1036_s14, 1  ;;  %v367_v0 = vlaneseq (!%p315_p2)  ;;  %v381_v1 = vld [vmem:[%s1605_s1] sm:$0xff] (!%p315_p2)  ;;  %v382_v3 = vld [vmem:[%s1605_s1 + $0x8] sm:$0xff] (!%p315_p2)  ;;  %v383_v7 = vld [vmem:[%s1605_s1 + $0x10] sm:$0xff] (!%p315_p2)  ;;  %vm378_vm0 = vcmask (!%p315_p2), 1042432   ;;  %vm414_vm1 = vcmask (!%p315_p2), 1046528  }
   0x6   : > { %318 = sbr.rel (%p315_p2) target bundleno = 1658 (0x67a), region = 56  ;;  %v1096_v4 = vpack.c.bf16 (!%p315_p2), %v382_v3, %v381_v1  ;;  %v384_v8 = vld [vmem:[%s1605_s1 + $0x18] sm:$0xff] (!%p315_p2)  ;;  %v385_v19 = vld [vmem:[%s1605_s1 + $0x20] sm:$0xff] (!%p315_p2)  ;;  %s1214_s29 = smov (!%p315_p2), 16   ;;  %vm424_vm2 = vcmask (!%p315_p2), 1045504   ;;  %vm434_vm3 = vcmask (!%p315_p2), 1044480  }
   0x7   : > { %v1288_v2 = vshrl.u32 (!%p315_p2), %v367_v0, 7  ;;  %v1100_v9 = vpack.c.bf16 (!%p315_p2), %v384_v8, %v383_v7  ;;  %s1215_s30 = smov (!%p315_p2), 8   ;;  %s1216_s11 = smov (!%p315_p2), 24   ;;  %vm444_vm4 = vcmask (!%p315_p2), 1043456   ;;  %vm454_vm5 = vcmask (!%p315_p2), 64512   ;;  %v387_v45 = vld [vmem:[%s1607_s3] sm:$0xff] (!%p315_p2) }
   0x8   : > { %1097 = vmatprep.subr.bf16.mxu1 (!%p315_p2), %v1096_v4  ;;  %s1217_s12 = smov (!%p315_p2), 32   ;;  %vm457_vm6 = vcmask (!%p315_p2), 130048   ;;  %vm460_vm7 = vcmask (!%p315_p2), 195584   ;;  %vm463_vm8 = vcmask (!%p315_p2), 261120   ;;  %vm472_vm9 = vcmask (!%p315_p2), 326656   ;;  %v388_v46 = vld [vmem:[%s1607_s3 + $0x8] sm:$0xff] (!%p315_p2) }
   0x9   : > { %v369_v5 = vsub.s32 (!%p315_p2), 0, %v1288_v2  ;;  %v373_v6 = vsub.s32 (!%p315_p2), 7, %v1288_v2  ;;  %1099 = vmatpush3.bf16.msra.mxu1 (!%p315_p2), %v1096_v4  ;;  %v389_v47 = vld [vmem:[%s1607_s3 + $0x10] sm:$0xff] (!%p315_p2)  ;;  %v1218_v48 = vmov (!%p315_p2), 0.0|0.0   ;;  %v1105_v49 = vpack.c.bf16 (!%p315_p2), %v388_v46, %v387_v45  ;;  %v390_v50 = vld [vmem:[%s1607_s3 + $0x18] sm:$0xff] (!%p315_p2)  ;;  %v391_v52 = vld [vmem:[%s1607_s3 + $0x20] sm:$0xff] (!%p315_p2) }
   0xa   : > { %1101 = vmatprep.subr.bf16.mxu1 (!%p315_p2), %v1100_v9  ;;  %v1108_v51 = vpack.c.bf16 (!%p315_p2), %v390_v50, %v389_v47  ;;  %v392_v53 = vld [vmem:[%s1607_s3 + $0x28] sm:$0xff] (!%p315_p2)  ;;  %v393_v55 = vld [vmem:[%s1607_s3 + $0x30] sm:$0xff] (!%p315_p2)  ;;  %v394_v56 = vld [vmem:[%s1607_s3 + $0x38] sm:$0xff] (!%p315_p2)  ;;  %s1219_s23 = smov (!%p315_p2), 124   ;;  %vm571_vm12 = vcmask (!%p315_p2), 523264   ;;  %s1220_s24 = smov (!%p315_p2), 64  }
   0xb   : > { %v1111_v54 = vpack.c.bf16 (!%p315_p2), %v392_v53, %v391_v52  ;;  %v1114_v57 = vpack.c.bf16 (!%p315_p2), %v394_v56, %v393_v55  ;;  %v395_v58 = vld [vmem:[%s1607_s3 + $0x40] sm:$0xff] (!%p315_p2)  ;;  %v396_v59 = vld [vmem:[%s1607_s3 + $0x48] sm:$0xff] (!%p315_p2)  ;;  %v397_v61 = vld [vmem:[%s1607_s3 + $0x50] sm:$0xff] (!%p315_p2)  ;;  %s1221_s25 = smov (!%p315_p2), 4   ;;  %vm658_vm13 = vcmask (!%p315_p2), 31744  }
   0xc   : > { %v1117_v60 = vpack.c.bf16 (!%p315_p2), %v396_v59, %v395_v58  ;;  %v398_v62 = vld [vmem:[%s1607_s3 + $0x58] sm:$0xff] (!%p315_p2)  ;;  %v399_v0 = vld [vmem:[%s1607_s3 + $0x60] sm:$0xff] (!%p315_p2)  ;;  %v400_v1 = vld [vmem:[%s1607_s3 + $0x68] sm:$0xff] (!%p315_p2) }
   0xd   : > { %s1616_s14 = smov (!%p354_p3, %s1036_s14), 1  ;;  %1103 = vmatpush3.bf16.msra.mxu1 %v1100_v9  ;;  %v1120_v63 = vpack.c.bf16 %v398_v62, %v397_v61  ;;  %v1123_v3 = vpack.c.bf16 %v400_v1, %v399_v0  ;;  %v401_v4 = vld [vmem:[%s1607_s3 + $0x70] sm:$0xff]  ;;  %v402_v7 = vld [vmem:[%s1607_s3 + $0x78] sm:$0xff]  ;;  %v403_v9 = vld [vmem:[%s1607_s3 + $0x80] sm:$0xff] }
   0xe   : > { %s1293_s19 = sshll.u32 %s1616_s14, 3  ;;  %1078 = vmatprep.subr.mxu1 %v385_v19  ;;  %v1126_v8 = vpack.c.bf16 %v402_v7, %v401_v4  ;;  %v676_v47 = vld [vmem:[%s1609_s5] sm:$0xff]  ;;  %v678_v53 = vld [vmem:[%s1609_s5 + $0x10] sm:$0xff] }
   0xf   : > { %s357_s26 = scalar_lea.vmem %s1604_s0, %s1293_s19  ;;  %s365_s16 = scalar_lea.vmem %s1614_s10, %s1293_s19 }
  0x10   : > { %v1307_v10 = vld [vmem:[%s357_s26] sm:$0xff]  ;;  %s361_s20 = scalar_lea.vmem %s1613_s9, %s1293_s19 }
  0x11   : > { %v374_v11 = vrot.slane %v1307_v10, %v373_v6  ;;  %v376_v12 = vrot.slane %v1307_v10, 5  ;;  %v370_v13 = vrot.slane %v1307_v10, %v369_v5  ;;  %1079 = vmatpush3.msra.mxu1 %v385_v19  ;;  %v409_v19 = vld [vmem:[%s1607_s3 + $0xb0] sm:$0xff] }
  0x12   : > { %1104 = vmatprep.subr.bf16.mxu1 %v1218_v48 }
  0x13   : > { %v380_v14 = vsel %vm378_vm0, %v376_v12, %v374_v11  ;;  %v379_v15 = vsel %vm378_vm0, %v370_v13, %v376_v12  ;;  %v404_v11 = vld [vmem:[%s1607_s3 + $0x88] sm:$0xff]  ;;  %v405_v13 = vld [vmem:[%s1607_s3 + $0x90] sm:$0xff] }
  0x14   : > { %v426_v16 = vrot.slane %v380_v14, 2  ;;  %v416_v17 = vrot.slane %v380_v14, 1  ;;  %v415_v18 = vrot.slane %v379_v15, 1  ;;  %v436_v20 = vrot.slane %v380_v14, 3 }
  0x15   : > { %v425_v22 = vrot.slane %v379_v15, 2  ;;  %v435_v23 = vrot.slane %v379_v15, 3  ;;  %v446_v26 = vrot.slane %v380_v14, 4  ;;  %v445_v27 = vrot.slane %v379_v15, 4 }
  0x16   : > { %430 = vrot.lane.b32.xlu1 %v426_v16, %s1214_s29  ;;  %420 = vrot.lane.b32.xlu0 %v416_v17, %s1215_s30  ;;  %v417_v21 = vsel %vm414_vm1, %v415_v18, %v416_v17  ;;  %v1129_v12 = vpack.c.bf16 %v404_v11, %v403_v9  ;;  %v408_v17 = vld [vmem:[%s1607_s3 + $0xa8] sm:$0xff] }
  0x17   : > { %v427_v24 = vsel %vm424_vm2, %v425_v22, %v426_v16  ;;  %v437_v25 = vsel %vm434_vm3, %v435_v23, %v436_v20  ;;  %v447_v28 = vsel %vm444_vm4, %v445_v27, %v446_v26  ;;  %v407_v16 = vld [vmem:[%s1607_s3 + $0xa0] sm:$0xff] }
  0x18   : > { %v1135_v18 = vpack.c.bf16 %v408_v17, %v407_v16  ;;  %v1044_v22 = vld [vmem:[%s1606_s2] ss:$0 sm:$0xff] }
  0x1a   : > { %440 = vrot.lane.b32.xlu1 %v436_v20, %s1216_s11  ;;  %418 = vrot.lane.b32.xlu0 %v417_v21, %s1215_s30  ;;  %v410_v20 = vld [vmem:[%s1607_s3 + $0xb8] sm:$0xff] }
  0x1b   : > { %v1138_v21 = vpack.c.bf16 %v410_v20, %v409_v19 }
  0x1e   : > { %428 = vrot.lane.b32.xlu1 %v427_v24, %s1214_s29  ;;  %438 = vrot.lane.b32.xlu0 %v437_v25, %s1216_s11 }
  0x22   : > { %450 = vrot.lane.b32.xlu1 %v446_v26, %s1217_s12  ;;  %448 = vrot.lane.b32.xlu0 %v447_v28, %s1217_s12 }
  0x26   : > { %652 = vrot.lane.b32.xlu1 %v1307_v10, %s1219_s23 }
  0x88   : > { %v431_v29 = vpop.permute.xlu1 %430  ;;  %v421_v30 = vpop.permute.xlu0 %420 }
  0x89   : > { %v456_v33 = vsel %vm454_vm5, %v380_v14, %v421_v30  ;;  %v406_v14 = vld [vmem:[%s1607_s3 + $0x98] sm:$0xff] }
  0x8a   : > { %v459_v38 = vsel %vm457_vm6, %v456_v33, %v431_v29 }
  0x8c   : > { %v441_v31 = vpop.permute.xlu1 %440  ;;  %v419_v32 = vpop.permute.xlu0 %418 }
  0x8d   : > { %v455_v34 = vsel %vm454_vm5, %v379_v15, %v419_v32  ;;  %v462_v39 = vsel %vm460_vm7, %v459_v38, %v441_v31  ;;  %v1132_v15 = vpack.c.bf16 %v406_v14, %v405_v13 }
  0x90   : > { %v429_v35 = vpop.permute.xlu1 %428  ;;  %v439_v36 = vpop.permute.xlu0 %438 }
  0x91   : > { %v458_v37 = vsel %vm457_vm6, %v455_v34, %v429_v35 }
  0x92   : > { %v461_v40 = vsel %vm460_vm7, %v458_v37, %v439_v36 }
  0x94   : > { %v451_v41 = vpop.permute.xlu1 %450  ;;  %v449_v42 = vpop.permute.xlu0 %448 }
  0x95   : > { %v465_v43 = vsel %vm463_vm8, %v462_v39, %v451_v41  ;;  %v464_v44 = vsel %vm463_vm8, %v461_v40, %v449_v42  ;;  %v1047_v39 = vld [vmem:[%s1608_s4] ss:$0 sm:$0xff] }
  0x96   : > { %1080 = vmatprep.mubr.msk.f32.mxu1 %vm472_vm9, %v464_v44 }
  0x97   : > { %1081 = vmatmul.mubr.msk.f32.vlgmr.msra.gmra.mrb[0].mxu1 %vm472_vm9, %v465_v43 }
  0x98   : > { %1106 = vmatpush1.bf16.msra.mxu1 %v1105_v49  ;;  %v653_v45 = vpop.permute.xlu1 %652  ;;  %v677_v49 = vld [vmem:[%s1609_s5 + $0x8] sm:$0xff] }
  0x99   : > { %1107 = vmatprep.subr.bf16.mxu1 %v1218_v48  ;;  %v1140_v50 = vpack.c.bf16 %v677_v49, %v676_v47  ;;  %v696_v47 = vld [vmem:[%s1611_s7 + $0x70] sm:$0xff]  ;;  %v697_v49 = vld [vmem:[%s1611_s7 + $0x78] sm:$0xff] }
  0x9b   : > { %1141 = vmatprep.subr.bf16.mxu0 %v1140_v50 }
  0x9c   : > { %1109 = vmatpush1.bf16.msra.mxu1 %v1108_v51  ;;  %1143 = vmatpush3.bf16.msra.mxu0 %v1140_v50  ;;  %v1170_v50 = vpack.c.bf16 %v697_v49, %v696_v47 }
  0x9d   : > { %1110 = vmatprep.subr.bf16.mxu1 %v1218_v48 }
  0xa0   : > { %1112 = vmatpush1.bf16.msra.mxu1 %v1111_v54  ;;  %v679_v54 = vld [vmem:[%s1609_s5 + $0x18] sm:$0xff] }
  0xa1   : > { %1113 = vmatprep.subr.bf16.mxu1 %v1218_v48  ;;  %v1144_v58 = vpack.c.bf16 %v679_v54, %v678_v53  ;;  %v699_v53 = vld [vmem:[%s1611_s7 + $0x88] sm:$0xff] }
  0xa3   : > { %1145 = vmatprep.subr.bf16.mxu0 %v1144_v58 }
  0xa4   : > { %1115 = vmatpush1.bf16.msra.mxu1 %v1114_v57  ;;  %1147 = vmatpush3.bf16.msra.mxu0 %v1144_v58  ;;  %v702_v58 = vld [vmem:[%s1611_s7 + $0xa0] sm:$0xff] }
  0xa5   : > { %1116 = vmatprep.subr.bf16.mxu1 %v1218_v48 }
  0xa8   : > { %1118 = vmatpush1.bf16.msra.mxu1 %v1117_v60 }
  0xa9   : > { %1119 = vmatprep.subr.bf16.mxu1 %v1218_v48 }
  0xac   : > { %1121 = vmatpush1.bf16.msra.mxu1 %v1120_v63  ;;  %v680_v63 = vld [vmem:[%s1609_s5 + $0x20] sm:$0xff] }
  0xad   : > { %1122 = vmatprep.subr.bf16.mxu1 %v1218_v48  ;;  %1091 = vmatprep.subr.mxu0 %v680_v63 }
  0xae   : > { %1092 = vmatpush3.msra.mxu0 %v680_v63 }
  0xaf   : > { %1148 = vmatprep.subr.bf16.mxu0 %v1218_v48 }
  0xb0   : > { %1124 = vmatpush1.bf16.msra.mxu1 %v1123_v3 }
  0xb1   : > { %1125 = vmatprep.subr.bf16.mxu1 %v1218_v48 }
  0xb4   : > { %1127 = vmatpush1.bf16.msra.mxu1 %v1126_v8 }
  0xb5   : > { %1128 = vmatprep.subr.bf16.mxu1 %v1218_v48 }
  0xb8   : > { %1130 = vmatpush1.bf16.msra.mxu1 %v1129_v12 }
  0xb9   : > { %1131 = vmatprep.subr.bf16.mxu1 %v1218_v48 }
  0xbc   : > { %1133 = vmatpush1.bf16.msra.mxu1 %v1132_v15 }
  0xbd   : > { %1134 = vmatprep.subr.bf16.mxu1 %v1218_v48 }
  0xc0   : > { %1136 = vmatpush1.bf16.msra.mxu1 %v1135_v18 }
  0xc1   : > { %1137 = vmatprep.subr.bf16.mxu1 %v1218_v48 }
  0xc4   : > { %1139 = vmatpush1.bf16.msra.mxu1 %v1138_v21 }
 0x16a   : > { %v1082_v23 = vpop.f32.mrb[0].mxu1 }
 0x16b   : > { %v551_v24 = vadd.f32 %v1082_v23, %v1044_v22  ;;  %v545_v25 = vpop.f32.mrb[1].mxu1 }
 0x16c   : > { %v546_v26 = vadd.f32 %v1044_v22, %v545_v25 }
 0x16d   : > { %vm555_vm10 = vcmp.gt.f32.partialorder %v551_v24, 0.0  ;;  %v557_v27 = vmul.f32 0.01, %v551_v24 }
 0x16e   : > { %vm554_vm11 = vcmp.gt.f32.partialorder %v546_v26, 0.0  ;;  %v556_v28 = vmul.f32 0.01, %v546_v26 }
 0x16f   : > { %v559_v29 = vsel %vm555_vm10, %v551_v24, %v557_v27  ;;  %v682_v27 = vld [vmem:[%s1611_s7] sm:$0xff] }
 0x170   : > { %v563_v30 = vrot.slane %v559_v29, 1  ;;  %v569_v31 = vrot.slane %v559_v29, 2  ;;  %v558_v32 = vsel %vm554_vm11, %v546_v26, %v556_v28  ;;  %v683_v28 = vld [vmem:[%s1611_s7 + $0x8] sm:$0xff]  ;;  %v684_v29 = vld [vmem:[%s1611_s7 + $0x10] sm:$0xff] }
 0x171   : > { %v568_v33 = vrot.slane %v558_v32, 2  ;;  %v562_v34 = vrot.slane %v558_v32, 1 }
 0x173   : > { %v570_v35 = vsel %vm424_vm2, %v568_v33, %v569_v31  ;;  %v564_v36 = vsel %vm414_vm1, %v562_v34, %v563_v30  ;;  %v1149_v30 = vpack.c.bf16 %v683_v28, %v682_v27  ;;  %v685_v31 = vld [vmem:[%s1611_s7 + $0x18] sm:$0xff]  ;;  %v686_v33 = vld [vmem:[%s1611_s7 + $0x20] sm:$0xff]  ;;  %v687_v34 = vld [vmem:[%s1611_s7 + $0x28] sm:$0xff] }
 0x174   : > { %1048 = vmatprep.mubr.msk.f32.mxu1 %vm571_vm12, %v570_v35  ;;  %565 = vrot.lane.b32.xlu0 %v564_v36, %s1220_s24  ;;  %v1155_v35 = vpack.c.bf16 %v687_v34, %v686_v33  ;;  %v688_v36 = vld [vmem:[%s1611_s7 + $0x30] sm:$0xff] }
 0x178   : > { %655 = vrot.lane.b32.xlu0 %v1307_v10, %s1221_s25 }
 0x1e6   : > { %v566_v37 = vpop.permute.xlu0 %565 }
 0x1e7   : > { %v572_v38 = vsel %vm571_vm12, %v558_v32, %v566_v37  ;;  %v1152_v32 = vpack.c.bf16 %v685_v31, %v684_v29  ;;  %v689_v37 = vld [vmem:[%s1611_s7 + $0x38] sm:$0xff] }
 0x1e8   : > { %646 = vmatmul.mubr.f32.vlgmr.msra.gmra.mrb[2].mxu1 %v572_v38  ;;  %v1158_v38 = vpack.c.bf16 %v689_v37, %v688_v36 }
 0x1ea   : > { %v656_v46 = vpop.permute.xlu0 %655 }
 0x1eb   : > { %v659_v10 = vsel %vm658_vm13, %v653_v45, %v656_v46  ;;  %v694_v45 = vld [vmem:[%s1611_s7 + $0x60] sm:$0xff]  ;;  %v695_v46 = vld [vmem:[%s1611_s7 + $0x68] sm:$0xff] }
 0x2bb   : > { %v647_v40 = vpop.f32.mrb[2].mxu1 }
 0x2bc   : > { %v648_v41 = vadd.f32 %v1047_v39, %v647_v40  ;;  %v649_v42 = vpop.f32.mrb[3].mxu1  ;;  %v690_v39 = vld [vmem:[%s1611_s7 + $0x40] sm:$0xff]  ;;  %v691_v40 = vld [vmem:[%s1611_s7 + $0x48] sm:$0xff] }
 0x2bd   : > { %v692_v42 = vld [vmem:[%s1611_s7 + $0x50] sm:$0xff] }
 0x2be   : > { %1200 = vtanh.f32 %v648_v41  ;;  %v1161_v41 = vpack.c.bf16 %v691_v40, %v690_v39 }
 0x2c8   : > { %v1201_v43 = vpop.eup %1200 }
 0x2c9   : > { %v660_v44 = vmul.f32 1.442695, %v1201_v43  ;;  %v693_v43 = vld [vmem:[%s1611_s7 + $0x58] sm:$0xff] }
 0x2cb   : > { %1202 = vpow2.f32 %v660_v44  ;;  %v1164_v44 = vpack.c.bf16 %v693_v43, %v692_v42 }
 0x2d5   : > { %v1203_v51 = vpop.eup %1202 }
 0x2d6   : > { %v1449_v52 = vmul.f32 %v1203_v51, %v659_v10  ;;  %v1167_v10 = vpack.c.bf16 %v695_v46, %v694_v45  ;;  %v698_v51 = vld [vmem:[%s1611_s7 + $0x80] sm:$0xff] }
 0x2d7   : > { %v1173_v54 = vpack.c.bf16 %v699_v53, %v698_v51 }
 0x2d8   : > { %v666_v55 = vrot.slane %v1449_v52, %v369_v5  ;;  %v670_v56 = vrot.slane %v1449_v52, %v373_v6  ;;  %v672_v57 = vrot.slane %v1449_v52, 5 }
 0x2da   : > { %v675_v59 = vsel %vm378_vm0, %v672_v57, %v670_v56  ;;  %v674_v60 = vsel %vm378_vm0, %v666_v55, %v672_v57  ;;  %v700_v55 = vld [vmem:[%s1611_s7 + $0x90] sm:$0xff]  ;;  %v701_v56 = vld [vmem:[%s1611_s7 + $0x98] sm:$0xff] }
 0x2db   : > { %v710_v61 = vrot.slane %v675_v59, 1  ;;  %v709_v62 = vrot.slane %v674_v60, 1  ;;  %v719_v5 = vrot.slane %v675_v59, 2  ;;  %v718_v6 = vrot.slane %v674_v60, 2 }
 0x2dc   : > { %v728_v1 = vrot.slane %v675_v59, 3  ;;  %v727_v3 = vrot.slane %v674_v60, 3  ;;  %v737_v7 = vrot.slane %v675_v59, 4  ;;  %v736_v8 = vrot.slane %v674_v60, 4 }
 0x2dd   : > { %714 = vrot.lane.b32.xlu0 %v710_v61, %s1215_s30  ;;  %v711_v2 = vsel %vm414_vm1, %v709_v62, %v710_v61  ;;  %v720_v0 = vsel %vm424_vm2, %v718_v6, %v719_v5  ;;  %v1176_v57 = vpack.c.bf16 %v701_v56, %v700_v55  ;;  %v704_v61 = vld [vmem:[%s1611_s7 + $0xb0] sm:$0xff]  ;;  %v705_v62 = vld [vmem:[%s1611_s7 + $0xb8] sm:$0xff] }
 0x2de   : > { %712 = vrot.lane.b32.xlu1 %v711_v2, %s1215_s30  ;;  %v729_v4 = vsel %vm434_vm3, %v727_v3, %v728_v1  ;;  %v738_v9 = vsel %vm444_vm4, %v736_v8, %v737_v7  ;;  %v1182_v63 = vpack.c.bf16 %v705_v62, %v704_v61  ;;  %v1049_v2 = vld [vmem:[%s1610_s6] ss:$0 sm:$0xff] }
 0x2e1   : > { %723 = vrot.lane.b32.xlu0 %v719_v5, %s1214_s29 }
 0x2e2   : > { %721 = vrot.lane.b32.xlu1 %v720_v0, %s1214_s29 }
 0x2e5   : > { %732 = vrot.lane.b32.xlu0 %v728_v1, %s1216_s11 }
 0x2e6   : > { %730 = vrot.lane.b32.xlu1 %v729_v4, %s1216_s11 }
 0x2e9   : > { %741 = vrot.lane.b32.xlu0 %v737_v7, %s1217_s12 }
 0x2ea   : > { %739 = vrot.lane.b32.xlu1 %v738_v9, %s1217_s12 }
 0x34f   : > { %v715_v11 = vpop.permute.xlu0 %714 }
 0x350   : > { %v713_v12 = vpop.permute.xlu1 %712  ;;  %v746_v18 = vsel %vm454_vm5, %v675_v59, %v715_v11  ;;  %v703_v59 = vld [vmem:[%s1611_s7 + $0xa8] sm:$0xff] }
 0x351   : > { %v745_v17 = vsel %vm454_vm5, %v674_v60, %v713_v12  ;;  %v1179_v60 = vpack.c.bf16 %v703_v59, %v702_v58 }
 0x353   : > { %v724_v13 = vpop.permute.xlu0 %723 }
 0x354   : > { %v722_v14 = vpop.permute.xlu1 %721  ;;  %v748_v21 = vsel %vm457_vm6, %v746_v18, %v724_v13 }
 0x355   : > { %v747_v19 = vsel %vm457_vm6, %v745_v17, %v722_v14  ;;  %v1052_v17 = vld [vmem:[%s1612_s8] ss:$0 sm:$0xff] }
 0x357   : > { %v733_v15 = vpop.permute.xlu0 %732 }
 0x358   : > { %v731_v16 = vpop.permute.xlu1 %730  ;;  %v750_v24 = vsel %vm460_vm7, %v748_v21, %v733_v15 }
 0x359   : > { %v749_v22 = vsel %vm460_vm7, %v747_v19, %v731_v16 }
 0x35b   : > { %v742_v20 = vpop.permute.xlu0 %741 }
 0x35c   : > { %v740_v23 = vpop.permute.xlu1 %739  ;;  %v752_v26 = vsel %vm463_vm8, %v750_v24, %v742_v20 }
 0x35d   : > { %v751_v25 = vsel %vm463_vm8, %v749_v22, %v740_v23 }
 0x35e   : > { %1093 = vmatprep.mubr.msk.f32.mxu0 %vm472_vm9, %v751_v25 }
 0x35f   : > { %1094 = vmatmul.mubr.msk.f32.vlgmr.msra.gmra.mrb[0].mxu0 %vm472_vm9, %v752_v26 }
 0x360   : > { %1150 = vmatpush1.bf16.msra.mxu0 %v1149_v30 }
 0x361   : > { %1151 = vmatprep.subr.bf16.mxu0 %v1218_v48 }
 0x364   : > { %1153 = vmatpush1.bf16.msra.mxu0 %v1152_v32 }
 0x365   : > { %1154 = vmatprep.subr.bf16.mxu0 %v1218_v48 }
 0x368   : > { %1156 = vmatpush1.bf16.msra.mxu0 %v1155_v35 }
 0x369   : > { %1157 = vmatprep.subr.bf16.mxu0 %v1218_v48 }
 0x36c   : > { %1159 = vmatpush1.bf16.msra.mxu0 %v1158_v38 }
 0x36d   : > { %1160 = vmatprep.subr.bf16.mxu0 %v1218_v48 }
 0x370   : > { %1162 = vmatpush1.bf16.msra.mxu0 %v1161_v41 }
 0x371   : > { %1163 = vmatprep.subr.bf16.mxu0 %v1218_v48 }
 0x374   : > { %1165 = vmatpush1.bf16.msra.mxu0 %v1164_v44 }
 0x375   : > { %1166 = vmatprep.subr.bf16.mxu0 %v1218_v48 }
 0x378   : > { %1168 = vmatpush1.bf16.msra.mxu0 %v1167_v10 }
 0x379   : > { %1169 = vmatprep.subr.bf16.mxu0 %v1218_v48 }
 0x37c   : > { %1171 = vmatpush1.bf16.msra.mxu0 %v1170_v50 }
 0x37d   : > { %1172 = vmatprep.subr.bf16.mxu0 %v1218_v48 }
 0x380   : > { %1174 = vmatpush1.bf16.msra.mxu0 %v1173_v54 }
 0x381   : > { %1175 = vmatprep.subr.bf16.mxu0 %v1218_v48 }
 0x384   : > { %1177 = vmatpush1.bf16.msra.mxu0 %v1176_v57 }
 0x385   : > { %1178 = vmatprep.subr.bf16.mxu0 %v1218_v48 }
 0x388   : > { %1180 = vmatpush1.bf16.msra.mxu0 %v1179_v60 }
 0x389   : > { %1181 = vmatprep.subr.bf16.mxu0 %v1218_v48 }
 0x38c   : > { %1183 = vmatpush1.bf16.msra.mxu0 %v1182_v63 }
 0x432   : > { %v1095_v5 = vpop.f32.mrb[0].mxu0 }
 0x433   : > { %v837_v6 = vadd.f32 %v1095_v5, %v1049_v2  ;;  %v831_v0 = vpop.f32.mrb[1].mxu0 }
 0x434   : > { %v832_v1 = vadd.f32 %v1049_v2, %v831_v0 }
 0x435   : > { %vm841_vm14 = vcmp.gt.f32.partialorder %v837_v6, 0.0  ;;  %v843_v3 = vmul.f32 0.01, %v837_v6 }
 0x436   : > { %vm840_vm15 = vcmp.gt.f32.partialorder %v832_v1, 0.0  ;;  %v842_v4 = vmul.f32 0.01, %v832_v1 }
 0x437   : > { %v845_v7 = vsel %vm841_vm14, %v837_v6, %v843_v3 }
 0x438   : > { %v849_v8 = vrot.slane %v845_v7, 1  ;;  %v855_v9 = vrot.slane %v845_v7, 2  ;;  %v844_v11 = vsel %vm840_vm15, %v832_v1, %v842_v4 }
 0x439   : > { %v854_v12 = vrot.slane %v844_v11, 2  ;;  %v848_v13 = vrot.slane %v844_v11, 1 }
 0x43b   : > { %v856_v48 = vsel %vm424_vm2, %v854_v12, %v855_v9  ;;  %v850_v14 = vsel %vm414_vm1, %v848_v13, %v849_v8 }
 0x43c   : > { %1053 = vmatprep.mubr.msk.f32.mxu0 %vm571_vm12, %v856_v48  ;;  %851 = vrot.lane.b32.xlu1 %v850_v14, %s1220_s24 }
 0x4ae   : > { %v852_v15 = vpop.permute.xlu1 %851 }
 0x4af   : > { %v857_v16 = vsel %vm571_vm12, %v844_v11, %v852_v15 }
 0x4b0   : > { %931 = vmatmul.mubr.f32.vlgmr.msra.gmra.mrb[2].mxu0 %v857_v16 }
 0x583   : > { %v932_v18 = vpop.f32.mrb[2].mxu0 }
 0x584   : > { %v933_v19 = vadd.f32 %v1052_v17, %v932_v18  ;;  %v934_v20 = vpop.f32.mrb[3].mxu0 }
 0x586   : > { %1204 = vtanh.f32 %v933_v19 }
 0x590   : > { %v1205_v21 = vpop.eup %1204 }
 0x591   : > { %947 = vrot.lane.b32.xlu1 %v1205_v21, %s1219_s23  ;;  %938 = vrot.lane.b32.xlu0 %v1205_v21, %s1221_s25 }
 0x603   : > { %v948_v22 = vpop.permute.xlu1 %947  ;;  %v939_v23 = vpop.permute.xlu0 %938 }
 0x604   : > { %v950_v24 = vsub.f32 %v1449_v52, %v948_v22  ;;  %v941_v25 = vadd.f32 %v939_v23, %v1449_v52 }
 0x606   : > { %951 = vst.msk [vmem:[%s365_s16] sm:$0xff] %vm658_vm13, %v950_v24  ;;  %943 = vrot.lane.b32.xlu0 %v941_v25, %s1219_s23 }
 0x678   : > { %v944_v26 = vpop.permute.xlu0 %943 }
 0x679   : > { %946 = vst.msk [vmem:[%s361_s20] sm:$0xff] %vm658_vm13, %v944_v26 }
 0x67a PF: > { %s21_s13 = sadd.s32 1, %s1212_s13  }
 0x67b   : > { %p18_p4 = scmp.ge.s32.totalorder %s21_s13, 4  }
 0x67d   :  { %20 = sbr.rel (!%p18_p4) target bundleno = 1 (0x1), region = 98 }

</bundles_post_ra>
